<compile_context>
chip_gen: v5e
topology: v5e:2x2
jax: 0.10.0
libtpu: 0.0.40
codegen_flags: <defaults>
</compile_context>

<pallas_src>
import functools

import jax
import jax.numpy as jnp
from jax import lax
from jax.experimental import pallas as pl
from jax.experimental.pallas import tpu as pltpu

EPS = 1e-8  # F.cosine_similarity eps


def _f32(x):
    # Upcast right after load (bf16 inputs stay bf16 only on the HBM->VMEM wire).
    return x if x.dtype == jnp.float32 else x.astype(jnp.float32)


def _baseline_loss_kernel(supp_ref, query_ref, ys_ref, nll_ref, dist_ref,
                          s_acc, q_acc, *, t_axis, inv_t):
    """Grid = (B_blocks, Q_blocks, T_blocks); T is the innermost ("arbitrary") reduction axis.

    supp_ref : (Bb, NS, t, D)  [t_axis=2]  or  (Bb, t, NS, D)  [t_axis=1, time-major, Bb==1]
    query_ref: (Bb, nq, t, D)              or  (Bb, t, nq, D)
    ys_ref   : (Bb, nq, 1) int32
    nll_ref  : (Bb, nq, 1) f32   per-query negative log-likelihood
    dist_ref : (Bb, nq, NS) f32  == 1 - cosine_similarity
    s_acc    : (Bb, NS, D) f32   q_acc: (Bb, nq, D) f32
    """
    t = pl.program_id(2)
    nt = pl.num_programs(2)

    @pl.when(t == 0)
    def _init():
        s_acc[...] = jnp.zeros_like(s_acc)
        q_acc[...] = jnp.zeros_like(q_acc)

    # Partial sums over this T tile (full-ref read-modify-write, no sub-tile slicing).
    if t_axis == 2:
        # (Bb, N, t, D): merge the leading dims so the reduce is a plain 3-D middle-axis sum.
        bb, ns, tt, d = supp_ref.shape
        _, nq, _, _ = query_ref.shape
        s_part = jnp.sum(_f32(supp_ref[...]).reshape(bb * ns, tt, d), axis=1).reshape(bb, ns, d)
        q_part = jnp.sum(_f32(query_ref[...]).reshape(bb * nq, tt, d), axis=1).reshape(bb, nq, d)
    else:
        # Time-major (Bb==1, t, N, D): mean over T is a leading-axis VPU add.
        s_part = jnp.sum(_f32(supp_ref[0]), axis=0)[None]
        q_part = jnp.sum(_f32(query_ref[0]), axis=0)[None]
    s_acc[...] = s_acc[...] + s_part
    q_acc[...] = q_acc[...] + q_part

    @pl.when(t == nt - 1)
    def _finalize():
        s_mean = s_acc[...] * inv_t                       # (Bb, NS, D)
        q_mean = q_acc[...] * inv_t                       # (Bb, nq, D)

        # Per-vector eps clamp (modern F.cosine_similarity): x / max(||x||, eps)
        # == x * rsqrt(max(||x||^2, eps^2)); rsqrt runs on the EUP slot.
        s_hat = s_mean * lax.rsqrt(
            jnp.maximum(jnp.sum(s_mean * s_mean, axis=-1, keepdims=True), EPS * EPS))
        q_hat = q_mean * lax.rsqrt(
            jnp.maximum(jnp.sum(q_mean * q_mean, axis=-1, keepdims=True), EPS * EPS))

        # Batched cosine similarities on the MXU, contraction on the last dim, no transpose.
        # (For production D >= 512, casting q_hat/s_hat to bf16 here is nearly free
        #  accuracy-wise and much faster on v6e/v7x; irrelevant at D=32..64 so kept f32.)
        cos = jnp.einsum('bqd,bsd->bqs', q_hat, s_hat,
                         preferred_element_type=jnp.float32)   # (Bb, nq, NS)

        dist_ref[...] = 1.0 - cos

        # Softmax cross-entropy with the cosine similarities as logits (mean taken outside).
        m = jnp.max(cos, axis=-1, keepdims=True)
        z = cos - m
        lse = jnp.log(jnp.sum(jnp.exp(z), axis=-1, keepdims=True))
        logprob = z - lse                                       # (Bb, nq, NS)

        cols = lax.broadcasted_iota(jnp.int32, cos.shape, 2)
        onehot = (cols == ys_ref[...]).astype(jnp.float32)      # labels broadcast from (Bb, nq, 1)
        nll_ref[...] = -jnp.sum(onehot * logprob, axis=-1, keepdims=True)


# --------------------------------------------------------------------------------------------
# Planning helpers (generation-aware, VMEM-accurate).
# --------------------------------------------------------------------------------------------

def _ceil_to(x, m):
    return -(-x // m) * m


def _vmem_bytes(shape, itemsize):
    """Padded VMEM residency of one buffer holding a block of `shape` (lanes->128, sublanes->8)."""
    s = list(shape)
    s[-1] = _ceil_to(s[-1], 128)
    if len(s) >= 2:
        s[-2] = _ceil_to(s[-2], 8)
    n = 1
    for d in s:
        n *= max(int(d), 1)
    return n * itemsize


def _divisors_desc(n):
    return [d for d in range(n, 0, -1) if n % d == 0]


def _tpu_vmem_budget():
    """(planner budget, scoped vmem limit) derived from the actual chip's VMEM capacity."""
    try:
        cap = int(getattr(pltpu.get_tpu_info(), "vmem_capacity_bytes", 64 << 20))
    except Exception:
        cap = 64 << 20                              # conservative fallback (v7x-sized)
    limit = min(cap * 3 // 4, 100 << 20)            # v7x(64MiB)->48MiB, v5e/v6e(128MiB)->96MiB
    budget = limit * 3 // 5                         # headroom for compiler temporaries
    return budget, limit


def _plan(B, NS, NQ, T, D, itemsize, budget):
    """Choose (episodes_per_block, queries_per_block, t_tile, time_major)."""

    def fits(Bb, nq, tt, time_major):
        if time_major:
            s_blk, q_blk = (Bb, tt, NS, D), (Bb, tt, nq, D)
        else:
            s_blk, q_blk = (Bb, NS, tt, D), (Bb, nq, tt, D)
        total = 2 * (_vmem_bytes(s_blk, itemsize) + _vmem_bytes(q_blk, itemsize))  # dbl-buffered in
        total += 2 * _vmem_bytes((Bb, nq, 1), 4)                                   # labels
        total += 2 * (_vmem_bytes((Bb, nq, NS), 4) + _vmem_bytes((Bb, nq, 1), 4))  # dbl-buffered out
        total += _vmem_bytes((Bb, NS, D), 4) + _vmem_bytes((Bb, nq, D), 4)         # scratch
        return total <= budget

    # Single-episode workloads: split NQ into two parallel blocks (when legal) so v7x's second
    # TensorCore gets work; supp's block index is unchanged across them, so supp is not re-DMA'd.
    if B == 1 and NQ % 2 == 0 and (NQ // 2) % 8 == 0:
        nq_tile = NQ // 2
    else:
        nq_tile = NQ

    # 1) Prefer full-T blocks with as many episodes per step as fit (contiguous DMA slabs,
    #    fewest grid steps); keep >= 2 steps on the parallel axes when B > 1 (v7x megacore).
    for Bb in _divisors_desc(B):
        if B > 1 and Bb == B:
            continue
        if fits(Bb, nq_tile, T, False):
            return Bb, nq_tile, T, False

    # 2) Otherwise tile T; the wrapper switches to a time-major (B, T, N, D) layout so every
    #    T tile is still one contiguous HBM segment.
    for tt in _divisors_desc(T):
        if tt == T:
            continue
        if fits(1, nq_tile, tt, True):
            return 1, nq_tile, tt, True
    return 1, nq_tile, 1, True


# --------------------------------------------------------------------------------------------
# Public wrapper.
# --------------------------------------------------------------------------------------------

def baseline_loss(supp, query, query_ys, *,
                  episodes_per_block=None, queries_per_block=None, t_tile=None,
                  vmem_budget_bytes=None, vmem_limit_bytes=None):
    """supp: (B, NS, T, D), query: (B, NQ, T, D), query_ys: (NQ,) or (B, NQ) int.

    Returns (loss, 1 - cosine_similarity).  For B == 1 this matches Baseline_Loss.forward
    exactly (dist has shape (NQ, NS)); for B > 1 the loss is the mean CE over all
    (episode, query) pairs and dist has shape (B, NQ, NS)."""
    supp = jnp.asarray(supp)
    query = jnp.asarray(query)
    if supp.dtype not in (jnp.float32, jnp.bfloat16):
        supp = supp.astype(jnp.float32)
    if query.dtype not in (jnp.float32, jnp.bfloat16):
        query = query.astype(jnp.float32)

    B, NS, T, D = supp.shape
    Bq, NQ, Tq, Dq = query.shape
    assert (B, T, D) == (Bq, Tq, Dq), "supp/query B, T and D must match"

    ys = jnp.asarray(query_ys, jnp.int32)
    if ys.ndim == 1:
        ys = ys[None, :]
    assert ys.shape == (B, NQ), f"query_ys must be (NQ,) or (B, NQ), got {ys.shape}"
    ys_in = ys.reshape(B, NQ, 1)

    default_budget, default_limit = _tpu_vmem_budget()
    budget = default_budget if vmem_budget_bytes is None else vmem_budget_bytes
    limit = default_limit if vmem_limit_bytes is None else vmem_limit_bytes

    Bb, nq_tile, tt, time_major = _plan(B, NS, NQ, T, D, supp.dtype.itemsize, budget)
    # Explicit overrides (mostly for testing / tuning).
    if episodes_per_block is not None:
        Bb = episodes_per_block
    if queries_per_block is not None:
        nq_tile = queries_per_block
    if t_tile is not None:
        tt = t_tile
        time_major = tt < T
    assert B % Bb == 0, "episodes_per_block must divide B"
    assert NQ % nq_tile == 0 and (nq_tile % 8 == 0 or nq_tile == NQ), \
        "queries_per_block must divide NQ and be a multiple of 8 (or equal NQ)"
    assert T % tt == 0, "t_tile must divide T"
    assert not (time_major and Bb != 1), "episode blocking is only used with full-T blocks"

    grid = (B // Bb, NQ // nq_tile, T // tt)

    if time_major:
        # Transpose once in the wrapper so each T tile is a single contiguous HBM segment.
        supp_in = jnp.transpose(supp, (0, 2, 1, 3))     # (B, T, NS, D)
        query_in = jnp.transpose(query, (0, 2, 1, 3))   # (B, T, NQ, D)
        supp_spec = pl.BlockSpec((Bb, tt, NS, D), lambda b, q, t: (b, t, 0, 0))
        query_spec = pl.BlockSpec((Bb, tt, nq_tile, D), lambda b, q, t: (b, t, q, 0))
        t_axis = 1
    else:
        supp_in, query_in = supp, query
        supp_spec = pl.BlockSpec((Bb, NS, tt, D), lambda b, q, t: (b, 0, t, 0))
        query_spec = pl.BlockSpec((Bb, nq_tile, tt, D), lambda b, q, t: (b, q, t, 0))
        t_axis = 2

    kernel = functools.partial(_baseline_loss_kernel, t_axis=t_axis, inv_t=1.0 / float(T))

    grid_spec = pltpu.PrefetchScalarGridSpec(
        num_scalar_prefetch=0,
        grid=grid,
        in_specs=[
            supp_spec,
            query_spec,
            pl.BlockSpec((Bb, nq_tile, 1), lambda b, q, t: (b, q, 0)),
        ],
        out_specs=(
            pl.BlockSpec((Bb, nq_tile, 1), lambda b, q, t: (b, q, 0)),
            pl.BlockSpec((Bb, nq_tile, NS), lambda b, q, t: (b, q, 0)),
        ),
        scratch_shapes=[
            pltpu.VMEM((Bb, NS, D), jnp.float32),       # class-prototype accumulator
            pltpu.VMEM((Bb, nq_tile, D), jnp.float32),  # query accumulator
        ],
    )

    itemsize = supp.dtype.itemsize
    nqb = NQ // nq_tile
    cost = pl.CostEstimate(
        flops=int(B * (2 * NQ * NS * D                  # cosine matmul
                       + (nqb * NS + NQ) * T * D        # mean accumulation
                       + 4 * (NS + NQ) * D              # normalisation
                       + 8 * NQ * NS)),                 # softmax / CE elementwise
        transcendentals=int(B * (NQ * NS + 2 * NQ + NS)),
        bytes_accessed=int(B * ((NS + NQ) * T * D * itemsize
                                + NQ * 4 + NQ * NS * 4 + NQ * 4)),
    )

    nll, dist = pl.pallas_call(
        kernel,
        out_shape=(
            jax.ShapeDtypeStruct((B, NQ, 1), jnp.float32),
            jax.ShapeDtypeStruct((B, NQ, NS), jnp.float32),
        ),
        grid_spec=grid_spec,
        compiler_params=pltpu.CompilerParams(
            dimension_semantics=("parallel", "parallel", "arbitrary"),
            vmem_limit_bytes=limit),
        cost_estimate=cost,
    )(supp_in, query_in, ys_in)

    loss = jnp.sum(nll) / (B * NQ)      # == nn.CrossEntropyLoss (mean reduction) for B == 1
    if B == 1:
        dist = dist[0]                  # mirror dist.squeeze(0) in the module
    return loss, dist


# --------------------------------------------------------------------------------------------
# Pure-JAX reference + tests.
# --------------------------------------------------------------------------------------------

def _reference(supp3, query3, ys):
    """Pure-JAX re-implementation of Baseline_Loss.forward for one episode."""
    s_m = supp3.astype(jnp.float32).mean(axis=1)      # (NS, D)
    q_m = query3.astype(jnp.float32).mean(axis=1)     # (NQ, D)
    s_hat = s_m / jnp.maximum(jnp.linalg.norm(s_m, axis=-1, keepdims=True), EPS)
    q_hat = q_m / jnp.maximum(jnp.linalg.norm(q_m, axis=-1, keepdims=True), EPS)
    cos = q_hat @ s_hat.T
    logp = jax.nn.log_softmax(cos, axis=-1)
    loss = -jnp.mean(logp[jnp.arange(q_m.shape[0]), ys])
    return loss, 1.0 - cos


if __name__ == "__main__":
    key = jax.random.PRNGKey(0)
    k = jax.random.split(key, 9)

    # --- Case 1: module-exact shapes (B = 1), matches Baseline_Loss.forward -------------------
    B, NS, NQ, T, D = 1, 5, 8, 8, 32
    supp = jax.random.normal(k[0], (B, NS, T, D), dtype=jnp.float32)
    query = jax.random.normal(k[1], (B, NQ, T, D), dtype=jnp.float32)
    ys = jax.random.randint(k[2], (NQ,), 0, NS, dtype=jnp.int32)

    loss, dist = baseline_loss(supp, query, ys)
    jax.block_until_ready((loss, dist))
    ref_loss, ref_dist = _reference(supp[0], query[0], ys)
    assert dist.shape == (NQ, NS)
    assert jnp.allclose(loss, ref_loss, atol=1e-5, rtol=1e-5)
    assert jnp.allclose(dist, ref_dist, atol=1e-5, rtol=1e-5)

    # --- Case 2: batched episodes folded into one grid step, bf16 on the wire ------------------
    B2, NS2, NQ2, T2, D2 = 4, 6, 16, 16, 64
    supp2 = jax.random.normal(k[3], (B2, NS2, T2, D2), dtype=jnp.bfloat16)
    query2 = jax.random.normal(k[4], (B2, NQ2, T2, D2), dtype=jnp.bfloat16)
    ys2 = jax.random.randint(k[5], (B2, NQ2), 0, NS2, dtype=jnp.int32)

    loss2, dist2 = baseline_loss(supp2, query2, ys2)
    jax.block_until_ready((loss2, dist2))
    refs = [_reference(supp2[b], query2[b], ys2[b]) for b in range(B2)]
    ref_loss2 = jnp.mean(jnp.stack([r[0] for r in refs]))
    ref_dist2 = jnp.stack([r[1] for r in refs])
    assert dist2.shape == (B2, NQ2, NS2)
    assert jnp.allclose(loss2, ref_loss2, atol=1e-4, rtol=1e-4)
    assert jnp.allclose(dist2, ref_dist2, atol=1e-4, rtol=1e-4)

    # --- Case 3: B=1 with query split (two parallel blocks) + forced time-major T tiling -------
    B3, NS3, NQ3, T3, D3 = 1, 7, 16, 12, 32
    supp3 = jax.random.normal(k[6], (B3, NS3, T3, D3), dtype=jnp.float32)
    query3 = jax.random.normal(k[7], (B3, NQ3, T3, D3), dtype=jnp.float32)
    ys3 = jax.random.randint(k[8], (NQ3,), 0, NS3, dtype=jnp.int32)

    loss3, dist3 = baseline_loss(supp3, query3, ys3, t_tile=4)
    jax.block_until_ready((loss3, dist3))
    ref_loss3, ref_dist3 = _reference(supp3[0], query3[0], ys3)
    assert dist3.shape == (NQ3, NS3)
    assert jnp.allclose(loss3, ref_loss3, atol=1e-5, rtol=1e-5)
    assert jnp.allclose(dist3, ref_dist3, atol=1e-5, rtol=1e-5)

    print("KERNEL_OK")
</pallas_src>

<mosaic_0001>
module attributes {stable_mosaic.version = 11 : i64} {
  func.func @_baseline_loss_kernel(%arg0: i32, %arg1: i32, %arg2: i32, %arg3: memref<1x5x8x32xf32, #tpu.memory_space<vmem>>, %arg4: memref<1x8x8x32xf32, #tpu.memory_space<vmem>>, %arg5: memref<1x8x1xi32, #tpu.memory_space<vmem>>, %arg6: memref<1x8x1xf32, #tpu.memory_space<vmem>>, %arg7: memref<1x8x5xf32, #tpu.memory_space<vmem>>, %arg8: memref<1x5x32xf32, #tpu.memory_space<vmem>>, %arg9: memref<1x8x32xf32, #tpu.memory_space<vmem>>) attributes {dimension_semantics = [#tpu.dimension_semantics<parallel>, #tpu.dimension_semantics<parallel>, #tpu.dimension_semantics<arbitrary>], iteration_bounds = array<i64: 1, 1, 1>, scalar_prefetch = 0 : i64, scratch_operands = 2 : i64, tpu.core_type = #tpu.core_type<tc>, window_params = [{transform_indices = @transform_0, window_bounds = array<i64: 1, 5, 8, 32>}, {transform_indices = @transform_1, window_bounds = array<i64: 1, 8, 8, 32>}, {transform_indices = @transform_2, window_bounds = array<i64: 1, 8, 1>}, {transform_indices = @transform_3, window_bounds = array<i64: 1, 8, 1>}, {transform_indices = @transform_4, window_bounds = array<i64: 1, 8, 5>}]} {
    %c0_i32 = arith.constant 0 : i32
    %0 = arith.cmpi eq, %arg2, %c0_i32 : i32
    %1 = arith.extui %0 : i1 to i32
    %c0_i32_0 = arith.constant 0 : i32
    %2 = arith.cmpi ne, %1, %c0_i32_0 : i32
    scf.if %2 {
      %cst_23 = arith.constant 0.000000e+00 : f32
      %20 = vector.broadcast %cst_23 : f32 to vector<1x5x32xf32>
      %c0_24 = arith.constant 0 : index
      %c0_25 = arith.constant 0 : index
      %c0_26 = arith.constant 0 : index
      %21 = vector.load %arg8[%c0_24, %c0_25, %c0_26] : memref<1x5x32xf32, #tpu.memory_space<vmem>>, vector<1x5x32xf32>
      tpu.vector_store %arg8[%c0_24, %c0_25, %c0_26], %20 {strides = array<i32>} : memref<1x5x32xf32, #tpu.memory_space<vmem>>, vector<1x5x32xf32>,
      %cst_27 = arith.constant 0.000000e+00 : f32
      %22 = vector.broadcast %cst_27 : f32 to vector<1x8x32xf32>
      %c0_28 = arith.constant 0 : index
      %c0_29 = arith.constant 0 : index
      %c0_30 = arith.constant 0 : index
      %23 = vector.load %arg9[%c0_28, %c0_29, %c0_30] : memref<1x8x32xf32, #tpu.memory_space<vmem>>, vector<1x8x32xf32>
      tpu.vector_store %arg9[%c0_28, %c0_29, %c0_30], %22 {strides = array<i32>} : memref<1x8x32xf32, #tpu.memory_space<vmem>>, vector<1x8x32xf32>,
    } else {
    }
    %c0 = arith.constant 0 : index
    %c0_1 = arith.constant 0 : index
    %c0_2 = arith.constant 0 : index
    %c0_3 = arith.constant 0 : index
    %3 = vector.load %arg3[%c0, %c0_1, %c0_2, %c0_3] : memref<1x5x8x32xf32, #tpu.memory_space<vmem>>, vector<1x5x8x32xf32>
    %4 = vector.shape_cast %3 : vector<1x5x8x32xf32> to vector<5x8x32xf32>
    %cst = arith.constant dense<0.000000e+00> : vector<5x32xf32>
    %5 = vector.multi_reduction <add>, %4, %cst [1] : vector<5x8x32xf32> to vector<5x32xf32>
    %6 = vector.shape_cast %5 : vector<5x32xf32> to vector<1x5x32xf32>
    %c0_4 = arith.constant 0 : index
    %c0_5 = arith.constant 0 : index
    %c0_6 = arith.constant 0 : index
    %c0_7 = arith.constant 0 : index
    %7 = vector.load %arg4[%c0_4, %c0_5, %c0_6, %c0_7] : memref<1x8x8x32xf32, #tpu.memory_space<vmem>>, vector<1x8x8x32xf32>
    %8 = vector.shape_cast %7 : vector<1x8x8x32xf32> to vector<8x8x32xf32>
    %cst_8 = arith.constant dense<0.000000e+00> : vector<8x32xf32>
    %9 = vector.multi_reduction <add>, %8, %cst_8 [1] : vector<8x8x32xf32> to vector<8x32xf32>
    %10 = vector.shape_cast %9 : vector<8x32xf32> to vector<1x8x32xf32>
    %c0_9 = arith.constant 0 : index
    %c0_10 = arith.constant 0 : index
    %c0_11 = arith.constant 0 : index
    %11 = vector.load %arg8[%c0_9, %c0_10, %c0_11] : memref<1x5x32xf32, #tpu.memory_space<vmem>>, vector<1x5x32xf32>
    %12 = arith.addf %11, %6 : vector<1x5x32xf32>
    %c0_12 = arith.constant 0 : index
    %c0_13 = arith.constant 0 : index
    %c0_14 = arith.constant 0 : index
    %13 = vector.load %arg8[%c0_12, %c0_13, %c0_14] : memref<1x5x32xf32, #tpu.memory_space<vmem>>, vector<1x5x32xf32>
    tpu.vector_store %arg8[%c0_12, %c0_13, %c0_14], %12 {strides = array<i32>} : memref<1x5x32xf32, #tpu.memory_space<vmem>>, vector<1x5x32xf32>,
    %c0_15 = arith.constant 0 : index
    %c0_16 = arith.constant 0 : index
    %c0_17 = arith.constant 0 : index
    %14 = vector.load %arg9[%c0_15, %c0_16, %c0_17] : memref<1x8x32xf32, #tpu.memory_space<vmem>>, vector<1x8x32xf32>
    %15 = arith.addf %14, %10 : vector<1x8x32xf32>
    %c0_18 = arith.constant 0 : index
    %c0_19 = arith.constant 0 : index
    %c0_20 = arith.constant 0 : index
    %16 = vector.load %arg9[%c0_18, %c0_19, %c0_20] : memref<1x8x32xf32, #tpu.memory_space<vmem>>, vector<1x8x32xf32>
    tpu.vector_store %arg9[%c0_18, %c0_19, %c0_20], %15 {strides = array<i32>} : memref<1x8x32xf32, #tpu.memory_space<vmem>>, vector<1x8x32xf32>,
    %c0_i32_21 = arith.constant 0 : i32
    %17 = arith.cmpi eq, %arg2, %c0_i32_21 : i32
    %18 = arith.extui %17 : i1 to i32
    %c0_i32_22 = arith.constant 0 : i32
    %19 = arith.cmpi ne, %18, %c0_i32_22 : i32
    scf.if %19 {
      %c0_23 = arith.constant 0 : index
      %c0_24 = arith.constant 0 : index
      %c0_25 = arith.constant 0 : index
      %20 = vector.load %arg8[%c0_23, %c0_24, %c0_25] : memref<1x5x32xf32, #tpu.memory_space<vmem>>, vector<1x5x32xf32>
      %cst_26 = arith.constant 1.250000e-01 : f32
      %21 = vector.broadcast %cst_26 : f32 to vector<1x5x32xf32>
      %22 = arith.mulf %20, %21 : vector<1x5x32xf32>
      %c0_27 = arith.constant 0 : index
      %c0_28 = arith.constant 0 : index
      %c0_29 = arith.constant 0 : index
      %23 = vector.load %arg9[%c0_27, %c0_28, %c0_29] : memref<1x8x32xf32, #tpu.memory_space<vmem>>, vector<1x8x32xf32>
      %cst_30 = arith.constant 1.250000e-01 : f32
      %24 = vector.broadcast %cst_30 : f32 to vector<1x8x32xf32>
      %25 = arith.mulf %23, %24 : vector<1x8x32xf32>
      %26 = arith.mulf %22, %22 : vector<1x5x32xf32>
      %cst_31 = arith.constant dense<0.000000e+00> : vector<1x5xf32>
      %27 = vector.multi_reduction <add>, %26, %cst_31 [2] : vector<1x5x32xf32> to vector<1x5xf32>
      %28 = vector.shape_cast %27 : vector<1x5xf32> to vector<1x5x1xf32>
      %cst_32 = arith.constant 1.000000e-16 : f32
      %29 = vector.broadcast %cst_32 : f32 to vector<1x5x1xf32>
      %30 = arith.maximumf %28, %29 : vector<1x5x1xf32>
      %31 = math.rsqrt %30 : vector<1x5x1xf32>
      %32 = vector.broadcast %31 : vector<1x5x1xf32> to vector<1x5x32xf32>
      %33 = arith.mulf %22, %32 : vector<1x5x32xf32>
      %34 = arith.mulf %25, %25 : vector<1x8x32xf32>
      %cst_33 = arith.constant dense<0.000000e+00> : vector<1x8xf32>
      %35 = vector.multi_reduction <add>, %34, %cst_33 [2] : vector<1x8x32xf32> to vector<1x8xf32>
      %36 = vector.shape_cast %35 : vector<1x8xf32> to vector<1x8x1xf32>
      %cst_34 = arith.constant 1.000000e-16 : f32
      %37 = vector.broadcast %cst_34 : f32 to vector<1x8x1xf32>
      %38 = arith.maximumf %36, %37 : vector<1x8x1xf32>
      %39 = math.rsqrt %38 : vector<1x8x1xf32>
      %40 = vector.broadcast %39 : vector<1x8x1xf32> to vector<1x8x32xf32>
      %41 = arith.mulf %25, %40 : vector<1x8x32xf32>
      "tpu.trace_start"() <{level = 10 : i32, message = "bqd,bsd->bqs"}> : () -> ()
      %cst_35 = arith.constant dense<0.000000e+00> : vector<1x8x5xf32>
      %42 = tpu.matmul %41, %33, %cst_35 {dimension_numbers = #tpu.dot_dimension_numbers<[2], [2], [1], [1], [0, 0, 0, 1, 1, 1], [0], [0]>} : vector<1x8x32xf32>, vector<1x5x32xf32>, vector<1x8x5xf32> -> vector<1x8x5xf32>
      "tpu.trace_stop"() : () -> ()
      %cst_36 = arith.constant 1.000000e+00 : f32
      %43 = vector.broadcast %cst_36 : f32 to vector<1x8x5xf32>
      %44 = arith.subf %43, %42 : vector<1x8x5xf32>
      %c0_37 = arith.constant 0 : index
      %c0_38 = arith.constant 0 : index
      %c0_39 = arith.constant 0 : index
      %45 = vector.load %arg7[%c0_37, %c0_38, %c0_39] : memref<1x8x5xf32, #tpu.memory_space<vmem>>, vector<1x8x5xf32>
      tpu.vector_store %arg7[%c0_37, %c0_38, %c0_39], %44 {strides = array<i32>} : memref<1x8x5xf32, #tpu.memory_space<vmem>>, vector<1x8x5xf32>,
      %cst_40 = arith.constant dense<0xFF800000> : vector<1x8xf32>
      %46 = vector.multi_reduction <maximumf>, %42, %cst_40 [2] : vector<1x8x5xf32> to vector<1x8xf32>
      %47 = vector.shape_cast %46 : vector<1x8xf32> to vector<1x8x1xf32>
      %48 = vector.broadcast %47 : vector<1x8x1xf32> to vector<1x8x5xf32>
      %49 = arith.subf %42, %48 : vector<1x8x5xf32>
      %50 = math.exp %49 : vector<1x8x5xf32>
      %cst_41 = arith.constant dense<0.000000e+00> : vector<1x8xf32>
      %51 = vector.multi_reduction <add>, %50, %cst_41 [2] : vector<1x8x5xf32> to vector<1x8xf32>
      %52 = vector.shape_cast %51 : vector<1x8xf32> to vector<1x8x1xf32>
      %53 = math.log %52 : vector<1x8x1xf32>
      %54 = vector.broadcast %53 : vector<1x8x1xf32> to vector<1x8x5xf32>
      %55 = arith.subf %49, %54 : vector<1x8x5xf32>
      %56 = tpu.iota {dimensions = array<i32: 2>} : vector<1x8x5xi32>
      %c0_42 = arith.constant 0 : index
      %c0_43 = arith.constant 0 : index
      %c0_44 = arith.constant 0 : index
      %57 = vector.load %arg5[%c0_42, %c0_43, %c0_44] : memref<1x8x1xi32, #tpu.memory_space<vmem>>, vector<1x8x1xi32>
      %58 = vector.broadcast %57 : vector<1x8x1xi32> to vector<1x8x5xi32>
      %59 = arith.cmpi eq, %56, %58 : vector<1x8x5xi32>
      %60 = arith.extui %59 : vector<1x8x5xi1> to vector<1x8x5xi32>
      %61 = arith.sitofp %60 : vector<1x8x5xi32> to vector<1x8x5xf32>
      %62 = arith.mulf %61, %55 : vector<1x8x5xf32>
      %cst_45 = arith.constant dense<0.000000e+00> : vector<1x8xf32>
      %63 = vector.multi_reduction <add>, %62, %cst_45 [2] : vector<1x8x5xf32> to vector<1x8xf32>
      %64 = vector.shape_cast %63 : vector<1x8xf32> to vector<1x8x1xf32>
      %cst_46 = arith.constant 0.000000e+00 : f32
      %65 = vector.broadcast %cst_46 : f32 to vector<1x8x1xf32>
      %66 = arith.subf %65, %64 : vector<1x8x1xf32>
      %c0_47 = arith.constant 0 : index
      %c0_48 = arith.constant 0 : index
      %c0_49 = arith.constant 0 : index
      %67 = vector.load %arg6[%c0_47, %c0_48, %c0_49] : memref<1x8x1xf32, #tpu.memory_space<vmem>>, vector<1x8x1xf32>
      tpu.vector_store %arg6[%c0_47, %c0_48, %c0_49], %66 {strides = array<i32>} : memref<1x8x1xf32, #tpu.memory_space<vmem>>, vector<1x8x1xf32>,
    } else {
    }
    return
  }
  func.func @transform_0(%arg0: i32, %arg1: i32, %arg2: i32) -> (i32, i32, i32, i32) {
    %c0_i32 = arith.constant 0 : i32
    %c0_i32_0 = arith.constant 0 : i32
    %c0_i32_1 = arith.constant 0 : i32
    return %arg0, %c0_i32, %arg2, %c0_i32_0 : i32, i32, i32, i32
  }
  func.func @transform_1(%arg0: i32, %arg1: i32, %arg2: i32) -> (i32, i32, i32, i32) {
    %c0_i32 = arith.constant 0 : i32
    %c0_i32_0 = arith.constant 0 : i32
    return %arg0, %arg1, %arg2, %c0_i32 : i32, i32, i32, i32
  }
  func.func @transform_2(%arg0: i32, %arg1: i32, %arg2: i32) -> (i32, i32, i32) {
    %c0_i32 = arith.constant 0 : i32
    %c0_i32_0 = arith.constant 0 : i32
    return %arg0, %arg1, %c0_i32 : i32, i32, i32
  }
  func.func @transform_3(%arg0: i32, %arg1: i32, %arg2: i32) -> (i32, i32, i32) {
    %c0_i32 = arith.constant 0 : i32
    %c0_i32_0 = arith.constant 0 : i32
    return %arg0, %arg1, %c0_i32 : i32, i32, i32
  }
  func.func @transform_4(%arg0: i32, %arg1: i32, %arg2: i32) -> (i32, i32, i32) {
    %c0_i32 = arith.constant 0 : i32
    %c0_i32_0 = arith.constant 0 : i32
    return %arg0, %arg1, %c0_i32 : i32, i32, i32
  }
}

</mosaic_0001>

<bundles_post_ra>
// kernel: tpu_custom_call.1
= control target key start
LH: loop header
LB: loop body
LE: loop exit
PB: predicated region body
PF: predicated region fallthrough
CT: control target
= control target key end

     0   :  { %10 = vsyncpa [#allocation5], 0  ;;  %s460_s0 = inlined_call_operand.hbm [shape: f32[1,5,8,32], index: 0, kind: input, shape index: {}]   ;;  %s461_s1 = inlined_call_operand.hbm [shape: f32[1,8,8,32], index: 1, kind: input, shape index: {}]   ;;  %s462_s2 = inlined_call_operand.vmem [shape: s32[1,8,1], index: 2, kind: input, shape index: {}]   ;;  %s463_s3 = inlined_call_operand.vmem [shape: f32[1,8,1], index: 3, kind: output, shape index: {0}]   ;;  %s464_s4 = inlined_call_operand.vmem [shape: f32[1,8,5], index: 4, kind: output, shape index: {1}]  }
   0x1   :  { %s16_s17 = sshll.u32 %s460_s0, 4  ;;  %s17_s17 = int_to_ptr.hbm [resolvable:$true] %s16_s17 }
   0x2   :  { %11 = vsyncpa [#allocation7], 0  ;;  %s378_s18 = smov [#allocation4]   ;;  %s29_s22 = sshll.u32 %s461_s1, 4  ;;  %s30_s22 = int_to_ptr.hbm [resolvable:$true] %s29_s22 }
   0x3   :  { %s18_s19 = sshll.u32 %s378_s18, 4  ;;  %s379_s23 = smov 128   ;;  %s19_s19 = int_to_ptr.vmem [resolvable:$true] %s18_s19 }
   0x4   :  { %s380_s24 = smov 8   ;;  %s381_s25 = smov [#allocation6]  }
   0x5   :  { %24 = dma.hbm_to_vmem [thread:$0]  %s17_s17, 640, %s19_s19, [#allocation5], %s379_s23, %s379_s23, %s380_s24  }
   0x6   :  { %s31_s26 = sshll.u32 %s381_s25, 4  ;;  %s32_s26 = int_to_ptr.vmem [resolvable:$true] %s31_s26 }
   0x7   :  { %37 = dma.hbm_to_vmem [thread:$0]  %s30_s22, 1024, %s32_s26, [#allocation7], %s379_s23, %s379_s23, %s380_s24  }
   0x8   :  { %374 = dma.done.wait [#allocation5], 640  }
   0x9   :  { %375 = vsyncadd [#allocation5], 4294966656 }
   0xa   :  { %376 = dma.done.wait [#allocation7], 1024  }
   0xb   :  { %377 = vsyncadd [#allocation7], 4294966272  ;;  %vm52_vm0 = vcmask 258048   ;;  %v382_v0 = vmov 0.0   ;;  %vm54_vm1 = vcmask 261120   ;;  %v56_v1 = vld [vmem:[#allocation4] sm:$0xff] }
   0xc   :  { %53 = vst.msk [vmem:[#allocation2] sm:$0x1f] %vm52_vm0, %v382_v0  ;;  %v57_v2 = vld [vmem:[#allocation4 + $0x8] sm:$0xff]  ;;  %v58_v3 = vld [vmem:[#allocation4 + $0x10] sm:$0xff]  ;;  %v59_v4 = vld [vmem:[#allocation4 + $0x18] sm:$0xff]  ;;  %v62_v6 = vsel %vm54_vm1, %v56_v1, 0.0 }
   0xd   :  { %55 = vst.msk [vmem:[#allocation3] sm:$0xff] %vm54_vm1, %v382_v0  ;;  %v60_v5 = vld [vmem:[#allocation4 + $0x20] sm:$0xff]  ;;  %v69_v7 = vsel %vm54_vm1, %v57_v2, 0.0  ;;  %v76_v8 = vsel %vm54_vm1, %v58_v3, 0.0  ;;  %v97_v9 = vld [vmem:[#allocation6] sm:$0xff]  ;;  %v63_v10 = vrot.slane %v62_v6, 4 }
   0xe   :  { %v70_v11 = vrot.slane %v69_v7, 4  ;;  %v77_v12 = vrot.slane %v76_v8, 4  ;;  %v83_v13 = vsel %vm54_vm1, %v59_v4, 0.0  ;;  %v98_v14 = vld [vmem:[#allocation6 + $0x8] sm:$0xff]  ;;  %v99_v15 = vld [vmem:[#allocation6 + $0x10] sm:$0xff]  ;;  %v90_v17 = vsel %vm54_vm1, %v60_v5, 0.0 }
   0xf   :  { %v84_v16 = vrot.slane %v83_v13, 4  ;;  %v105_v18 = vsel %vm54_vm1, %v97_v9, 0.0  ;;  %v64_v19 = vadd.f32 %v63_v10, %v62_v6  ;;  %v91_v22 = vrot.slane %v90_v17, 4  ;;  %v100_v48 = vld [vmem:[#allocation6 + $0x18] sm:$0xff]  ;;  %v101_v49 = vld [vmem:[#allocation6 + $0x20] sm:$0xff]  ;;  %v102_v50 = vld [vmem:[#allocation6 + $0x28] sm:$0xff] }
  0x10   :  { %v71_v20 = vadd.f32 %v70_v11, %v69_v7  ;;  %v78_v21 = vadd.f32 %v77_v12, %v76_v8  ;;  %v106_v24 = vrot.slane %v105_v18, 4  ;;  %v112_v25 = vsel %vm54_vm1, %v98_v14, 0.0  ;;  %v103_v58 = vld [vmem:[#allocation6 + $0x30] sm:$0xff]  ;;  %v104_v59 = vld [vmem:[#allocation6 + $0x38] sm:$0xff] }
  0x11   :  { %v85_v23 = vadd.f32 %v84_v16, %v83_v13  ;;  %v119_v26 = vsel %vm54_vm1, %v99_v15, 0.0  ;;  %v65_v27 = vrot.slane %v64_v19, 2  ;;  %v92_v30 = vadd.f32 %v91_v22, %v90_v17 }
  0x12   :  { %v72_v28 = vrot.slane %v71_v20, 2  ;;  %v79_v29 = vrot.slane %v78_v21, 2  ;;  %v107_v32 = vadd.f32 %v106_v24, %v105_v18  ;;  %v113_v33 = vrot.slane %v112_v25, 4 }
  0x13   :  { %v86_v31 = vrot.slane %v85_v23, 2  ;;  %v120_v34 = vrot.slane %v119_v26, 4  ;;  %vm167_vm2 = vcmask 1041409   ;;  %v66_v35 = vadd.f32 %v65_v27, %v64_v19 }
  0x14   :  { %v73_v36 = vadd.f32 %v72_v28, %v71_v20  ;;  %v80_v37 = vadd.f32 %v79_v29, %v78_v21  ;;  %v93_v38 = vrot.slane %v92_v30, 2  ;;  %vm169_vm3 = vcmask 1042434  }
  0x15   :  { %v87_v39 = vadd.f32 %v86_v31, %v85_v23  ;;  %v108_v40 = vrot.slane %v107_v32, 2  ;;  %v114_v41 = vadd.f32 %v113_v33, %v112_v25  ;;  %v121_v42 = vadd.f32 %v120_v34, %v119_v26  ;;  %v161_v23 = vld [vmem:[#allocation2] sm:$0x1f] }
  0x16   :  { %vm171_vm4 = vcmask 1043459   ;;  %v67_v43 = vrot.slane %v66_v35, 1  ;;  %v74_v44 = vrot.slane %v73_v36, 1  ;;  %v81_v45 = vrot.slane %v80_v37, 1 }
  0x17   :  { %v94_v46 = vadd.f32 %v93_v38, %v92_v30  ;;  %v88_v47 = vrot.slane %v87_v39, 1  ;;  %v109_v51 = vadd.f32 %v108_v40, %v107_v32  ;;  %v115_v52 = vrot.slane %v114_v41, 2 }
  0x18   :  { %v122_v53 = vrot.slane %v121_v42, 2  ;;  %v68_v54 = vadd.f32 %v67_v43, %v66_v35  ;;  %v75_v55 = vadd.f32 %v74_v44, %v73_v36  ;;  %vm173_vm5 = vcmask 1044484  }
  0x19   :  { %v95_v56 = vrot.slane %v94_v46, 1  ;;  %v82_v57 = vadd.f32 %v81_v45, %v80_v37  ;;  %v110_v60 = vrot.slane %v109_v51, 1  ;;  %v116_v61 = vadd.f32 %v115_v52, %v114_v41  ;;  %v179_v52 = vld [vmem:[#allocation3] sm:$0xff] }
  0x1a   :  { %v123_v62 = vadd.f32 %v122_v53, %v121_v42  ;;  %v89_v63 = vadd.f32 %v88_v47, %v87_v39  ;;  %v126_v1 = vsel %vm54_vm1, %v100_v48, 0.0  ;;  %v133_v2 = vsel %vm54_vm1, %v101_v49, 0.0 }
  0x1b   :  { %v140_v3 = vsel %vm54_vm1, %v102_v50, 0.0  ;;  %v96_v4 = vadd.f32 %v95_v56, %v94_v46  ;;  %v117_v5 = vrot.slane %v116_v61, 1  ;;  %v127_v7 = vrot.slane %v126_v1, 4 }
  0x1c   :  { %v124_v6 = vrot.slane %v123_v62, 1  ;;  %v134_v8 = vrot.slane %v133_v2, 4  ;;  %v141_v9 = vrot.slane %v140_v3, 4  ;;  %v147_v10 = vsel %vm54_vm1, %v103_v58, 0.0 }
  0x1d   :  { %v154_v11 = vsel %vm54_vm1, %v104_v59, 0.0  ;;  %v111_v12 = vadd.f32 %v110_v60, %v109_v51  ;;  %v118_v13 = vadd.f32 %v117_v5, %v116_v61  ;;  %v128_v14 = vadd.f32 %v127_v7, %v126_v1 }
  0x1e   :  { %v148_v15 = vrot.slane %v147_v10, 4  ;;  %v135_v16 = vadd.f32 %v134_v8, %v133_v2  ;;  %v142_v17 = vadd.f32 %v141_v9, %v140_v3  ;;  %v155_v18 = vrot.slane %v154_v11, 4 }
  0x1f   :  { %v168_v19 = vsel %vm167_vm2, %v75_v55, %v68_v54  ;;  %v125_v20 = vadd.f32 %v124_v6, %v123_v62  ;;  %v129_v21 = vrot.slane %v128_v14, 2  ;;  %v188_v32 = vsel %vm167_vm2, %v118_v13, %v111_v12 }
  0x20   :  { %v149_v22 = vadd.f32 %v148_v15, %v147_v10  ;;  %v170_v24 = vsel %vm169_vm3, %v82_v57, %v168_v19  ;;  %v136_v25 = vrot.slane %v135_v16, 2  ;;  %v143_v26 = vrot.slane %v142_v17, 2 }
  0x21   :  { %v156_v27 = vadd.f32 %v155_v18, %v154_v11  ;;  %v172_v28 = vsel %vm171_vm4, %v89_v63, %v170_v24  ;;  %v130_v29 = vadd.f32 %v129_v21, %v128_v14  ;;  %v189_v42 = vsel %vm169_vm3, %v125_v20, %v188_v32 }
  0x22   :  { %v150_v30 = vrot.slane %v149_v22, 2  ;;  %v174_v31 = vsel %vm173_vm5, %v96_v4, %v172_v28  ;;  %v137_v33 = vadd.f32 %v136_v25, %v135_v16  ;;  %v144_v34 = vadd.f32 %v143_v26, %v142_v17  ;;  %v283_v25 = vld [vmem:[%s462_s2] sm:$0xff] }
  0x23   :  { %v157_v35 = vrot.slane %v156_v27, 2  ;;  %v176_v36 = vadd.f32 %v174_v31, %v161_v23  ;;  %v131_v37 = vrot.slane %v130_v29, 1  ;;  %vm192_vm6 = vcmask 1045509  }
  0x24   :  { %v151_v38 = vadd.f32 %v150_v30, %v149_v22  ;;  %v138_v39 = vrot.slane %v137_v33, 1  ;;  %v145_v40 = vrot.slane %v144_v34, 1  ;;  %vm194_vm7 = vcmask 1046534  }
  0x25   :  { %v158_v41 = vadd.f32 %v157_v35, %v156_v27  ;;  %178 = vst.msk [vmem:[#allocation2] sm:$0x1f] %vm52_vm0, %v176_v36  ;;  %v132_v43 = vadd.f32 %v131_v37, %v130_v29  ;;  %vm196_vm8 = vcmask 1047559   ;;  %vm267_vm15 = vcmask 39936  }
  0x26   :  { %v152_v44 = vrot.slane %v151_v38, 1  ;;  %v139_v45 = vadd.f32 %v138_v39, %v137_v33  ;;  %v146_v46 = vadd.f32 %v145_v40, %v144_v34  ;;  %v383_v26 = vmov 0  }
  0x27   :  { %v159_v47 = vrot.slane %v158_v41, 1  ;;  %v190_v49 = vsel %vm171_vm4, %v132_v43, %v189_v42  ;;  %316 = vset.pattern.permute.xlu2 %v383_v26  ;;  %317 = vset.pattern.permute.xlu0 %v383_v26  ;;  %v281_v32 = vlaneseq }
  0x28   :  { %v153_v48 = vadd.f32 %v152_v44, %v151_v38  ;;  %v191_v51 = vsel %vm173_vm5, %v139_v45, %v190_v49  ;;  %285 = vperm.xlu2 %316, %v283_v25  }
  0x29   :  { %v160_v50 = vadd.f32 %v159_v47, %v158_v41  ;;  %v193_v53 = vsel %vm192_vm6, %v146_v46, %v191_v51  ;;  %v282_v34 = vand.u32 127, %v281_v32 }
  0x2a   :  { %v195_v54 = vsel %vm194_vm7, %v153_v48, %v193_v53 }
  0x2b   :  { %v197_v55 = vsel %vm196_vm8, %v160_v50, %v195_v54 }
  0x2c   :  { %v204_v56 = vld [vmem:[#allocation2] sm:$0x1f]  ;;  %v199_v57 = vadd.f32 %v197_v55, %v179_v52 }
  0x2d   :  { %v205_v58 = vmul.f32 0.125, %v204_v56 }
  0x2e   :  { %200 = vst.msk [vmem:[#allocation3] sm:$0xff] %vm54_vm1, %v199_v57 }
  0x2f   :  { %v208_v59 = vmul.f32 %v205_v58, %v205_v58 }
  0x31   :  { %v209_v60 = vsel %vm52_vm0, %v208_v59, 0.0 }
  0x32   :  { %210 = vadd.xlane.f32.xlu0 %v209_v60 }
  0x35   :  { %v206_v61 = vld [vmem:[#allocation3] sm:$0xff] }
  0x36   :  { %v207_v62 = vmul.f32 0.125, %v206_v61 }
  0x38   :  { %v224_v63 = vmul.f32 %v207_v62, %v207_v62 }
  0x3a   :  { %v225_v1 = vsel %vm54_vm1, %v224_v63, 0.0 }
  0x3b   :  { %226 = vadd.xlane.f32.xlu0 %v225_v1 }
  0x82   :  { %v286_v35 = vpop.permute.xlu2 %285 }
  0x83   :  { %vm287_vm0 = vcmp.eq.s32.totalorder %v282_v34, %v286_v35 }
  0x84   :  { %v309_v38 = vsel %vm287_vm0, 1.0, %v382_v0 }
  0xa5   :  { %v211_v2 = vpop.xlane.xlu0 %210 }
  0xa6   :  { %v212_v3 = vmax.f32 %v211_v2, 1e-16 }
  0xa8   :  { %318 = vrsqrt.f32 %v212_v3  ;;  %vm219_vm10 = vweird.f32 %v212_v3 }
  0xae   :  { %v319_v4 = vpop.eup %318  ;;  %v227_v6 = vpop.xlane.xlu0 %226 }
  0xaf   :  { %v214_v5 = vmul.f32 %v319_v4, %v212_v3  ;;  %v228_v7 = vmax.f32 %v227_v6, 1e-16  ;;  %vm220_vm9 = vweird.f32 %v319_v4 }
  0xb0   :  { %vm221_vm11 = vmor %vm219_vm10, %vm220_vm9 }
  0xb1   :  { %v215_v8 = vmul.f32 %v319_v4, %v214_v5  ;;  %320 = vrsqrt.f32 %v228_v7  ;;  %vm235_vm13 = vweird.f32 %v228_v7 }
  0xb3   :  { %v216_v9 = vmul.f32 0.5, %v215_v8 }
  0xb5   :  { %v217_v10 = vsub.f32 1.5, %v216_v9 }
  0xb7   :  { %v218_v11 = vmul.f32 %v319_v4, %v217_v10  ;;  %v321_v12 = vpop.eup %320 }
  0xb8   :  { %v230_v13 = vmul.f32 %v321_v12, %v228_v7  ;;  %vm236_vm12 = vweird.f32 %v321_v12 }
  0xb9   :  { %v222_v14 = vsel %vm221_vm11, %v319_v4, %v218_v11  ;;  %vm237_vm14 = vmor %vm235_vm13, %vm236_vm12 }
  0xba   :  { %v223_v15 = vmul.f32 %v222_v14, %v205_v58  ;;  %v231_v16 = vmul.f32 %v321_v12, %v230_v13 }
  0xbc   :  { %307 = vmatpush.xpose.msk.msra.mxu0 %vm54_vm1, %v223_v15  ;;  %v232_v17 = vmul.f32 0.5, %v231_v16 }
  0xbe   :  { %v233_v18 = vsub.f32 1.5, %v232_v17 }
  0xc0   :  { %v234_v19 = vmul.f32 %v321_v12, %v233_v18 }
  0xc2   :  { %v238_v20 = vsel %vm237_vm14, %v321_v12, %v234_v19 }
  0xc3   :  { %v239_v21 = vmul.f32 %v238_v20, %v207_v62 }
  0xc5   :  { %308 = vmatmul.msk.f32.vlgmr.msra.gmra.mxu0 %vm54_vm1, %v239_v21  ;;  %vm295_vm1 = vcmask 7168  }
 0x142   :  { %v263_v22 = vpop.f32.mrf.mxu0 }
 0x143   :  { %v266_v23 = vsub.f32 1.0, %v263_v22  ;;  %v269_v24 = vsel %vm267_vm15, %v263_v22, -inf }
 0x144   :  { %270 = vmax.xlane.f32.xlu1 %v269_v24 }
 0x145   :  { %268 = vst.msk [vmem:[%s464_s4] sm:$0xff] %vm267_vm15, %v266_v23 }
 0x1b7   :  { %v271_v27 = vpop.xlane.xlu1 %270 }
 0x1b8   :  { %v272_v28 = vsub.f32 %v263_v22, %v271_v27 }
 0x1ba   :  { %v273_v29 = vmul.f32 1.442695, %v272_v28 }
 0x1bc   :  { %322 = vpow2.f32 %v273_v29 }
 0x1c2   :  { %v323_v30 = vpop.eup %322 }
 0x1c3   :  { %v275_v31 = vsel %vm267_vm15, %v323_v30, 0.0 }
 0x1c4   :  { %276 = vadd.xlane.f32.xlu1 %v275_v31 }
 0x237   :  { %v277_v33 = vpop.xlane.xlu1 %276 }
 0x238   :  { %324 = vlog2.f32 %v277_v33 }
 0x23e   :  { %v325_v36 = vpop.eup %324 }
 0x23f   :  { %v279_v37 = vmul.f32 0.6931472, %v325_v36 }
 0x241   :  { %v280_v39 = vsub.f32 %v272_v28, %v279_v37 }
 0x243   :  { %v290_v40 = vmul.f32 %v309_v38, %v280_v39 }
 0x245   :  { %v291_v41 = vsel %vm267_vm15, %v290_v40, 0.0 }
 0x246   :  { %292 = vadd.xlane.f32.xlu2 %v291_v41 }
 0x2b9   :  { %v293_v42 = vpop.xlane.xlu2 %292 }
 0x2ba   :  { %v294_v43 = vsub.f32 0.0, %v293_v42 }
 0x2bc   :  { %296 = vst.msk [vmem:[%s463_s3] sm:$0xff] %vm295_vm1, %v294_v43 }
 0x2bd   :  { %305 = vsyncpa [#allocation5], 1 }
 0x2be   :  { %306 = vsyncpa [#allocation7], 1 }

</bundles_post_ra>
